<compile_context>
chip_gen: v5e
topology: v5e:2x2
jax: 0.10.0
libtpu: 0.0.40
codegen_flags: <defaults>
</compile_context>

<pallas_src>
import jax
import jax.numpy as jnp
from jax.experimental import pallas as pl
from jax.experimental.pallas import tpu as pltpu

LATENT = 10            # latent_size
D1, D2 = 50, 100       # decoder_layer_size = [50, 100]
D1P, D2P = 64, 128     # lane-friendly padded feature dims
EPS = 1e-5             # nn.BatchNorm1d default eps
MAX_TB = 512           # batch-tile cap (double-buffered VMEM cost is tiny)


def vae_decoder_kernel(x_ref, w1_ref, b1_ref, w2_ref, b2_ref, o_ref):
    """relu(relu(x @ W1' + b1') @ W2' + b2') with BN folded into W', b'."""
    # layer 1: Linear(10 -> 64pad) with folded BatchNorm, then ReLU
    h = jnp.dot(x_ref[...], w1_ref[...], preferred_element_type=jnp.float32)
    h = jnp.maximum(h + b1_ref[...], 0.0)                      # (TB, 64) f32
    # layer 2: Linear(64pad -> 128pad) with folded BatchNorm, then ReLU
    h2 = jnp.dot(h.astype(w2_ref.dtype), w2_ref[...],
                 preferred_element_type=jnp.float32)
    o_ref[...] = jnp.maximum(h2 + b2_ref[...], 0.0)            # (TB, 128) f32
    # TODO(synk): Dropout(0.25) is stochastic in train mode; eval-mode identity here.


def _pick_tb(batch):
    """Largest power-of-two batch tile <= MAX_TB keeping grid length >= 2
    whenever the batch allows it (v7x has 2 TensorCores to shard across)."""
    tb = 8
    while tb < MAX_TB and tb * 2 <= max(batch // 2, 8):
        tb *= 2
    return tb


def vae_decoder(x, w1f, b1f, w2f, b2f):
    """x: (B, 10).  Folded/padded params from fold_and_pad_params().
    Returns (B, 100) float32."""
    B = x.shape[0]
    tb = _pick_tb(B)
    Bp = pl.cdiv(B, tb) * tb
    xk = x.astype(w1f.dtype)            # bf16 matmul operand (f32 accumulate)
    if Bp != B:
        xk = jnp.pad(xk, ((0, Bp - B), (0, 0)))

    out = pl.pallas_call(
        vae_decoder_kernel,
        out_shape=jax.ShapeDtypeStruct((Bp, D2P), jnp.float32),
        grid_spec=pltpu.PrefetchScalarGridSpec(
            num_scalar_prefetch=0,
            grid=(Bp // tb,),
            in_specs=[
                pl.BlockSpec((tb, LATENT), lambda i: (i, 0)),    # x tile over batch
                pl.BlockSpec((LATENT, D1P), lambda i: (0, 0)),   # W1' (resident)
                pl.BlockSpec((1, D1P), lambda i: (0, 0)),        # b1' (resident)
                pl.BlockSpec((D1P, D2P), lambda i: (0, 0)),      # W2' (resident)
                pl.BlockSpec((1, D2P), lambda i: (0, 0)),        # b2' (resident)
            ],
            out_specs=pl.BlockSpec((tb, D2P), lambda i: (i, 0)),
        ),
        compiler_params=pltpu.CompilerParams(
            dimension_semantics=("parallel",)),
    )(xk, w1f, b1f, w2f, b2f)
    return out[:B, :D2]


def fold_and_pad_params(w1, b1, bn1, w2, b2, bn2, *, compute_dtype=jnp.bfloat16):
    """Fold eval-mode BatchNorm into the linear weights and zero-pad the
    feature dims to lane-friendly sizes.

    w1: (LATENT, D1), w2: (D1, D2) stored (in, out); bn = (gamma, beta, mean, var).
    Returns w1f (LATENT, 64) bf16, b1f (1, 64) f32, w2f (64, 128) bf16, b2f (1, 128) f32.
    """
    def fold(w, b, bn):
        g, be, m, v = bn
        scale = g / jnp.sqrt(v + EPS)
        return w * scale[None, :], (b - m) * scale + be

    w1f, b1f = fold(w1, b1, bn1)
    w2f, b2f = fold(w2, b2, bn2)
    w1f = jnp.pad(w1f, ((0, 0), (0, D1P - D1)))
    b1f = jnp.pad(b1f, ((0, D1P - D1),))
    w2f = jnp.pad(w2f, ((0, D1P - D1), (0, D2P - D2)))
    b2f = jnp.pad(b2f, ((0, D2P - D2),))
    return (w1f.astype(compute_dtype), b1f[None, :].astype(jnp.float32),
            w2f.astype(compute_dtype), b2f[None, :].astype(jnp.float32))


def make_params():
    """Deterministic synthetic module parameters (no checkpoint load)."""
    ks = jax.random.split(jax.random.PRNGKey(0), 12)
    w1 = jax.random.normal(ks[0], (LATENT, D1), jnp.float32) * 0.2
    b1 = jax.random.normal(ks[1], (D1,), jnp.float32) * 0.05
    w2 = jax.random.normal(ks[2], (D1, D2), jnp.float32) * 0.1
    b2 = jax.random.normal(ks[3], (D2,), jnp.float32) * 0.05
    # BatchNorm1d affine params + running stats (non-trivial, eval mode)
    bn1 = (1.0 + 0.1 * jax.random.normal(ks[4], (D1,), jnp.float32),
           0.1 * jax.random.normal(ks[5], (D1,), jnp.float32),
           0.1 * jax.random.normal(ks[6], (D1,), jnp.float32),
           jnp.abs(1.0 + 0.1 * jax.random.normal(ks[7], (D1,), jnp.float32)))
    bn2 = (1.0 + 0.1 * jax.random.normal(ks[8], (D2,), jnp.float32),
           0.1 * jax.random.normal(ks[9], (D2,), jnp.float32),
           0.1 * jax.random.normal(ks[10], (D2,), jnp.float32),
           jnp.abs(1.0 + 0.1 * jax.random.normal(ks[11], (D2,), jnp.float32)))
    return w1, b1, bn1, w2, b2, bn2


def reference_f32(x, w1, b1, bn1, w2, b2, bn2):
    """Pure-JAX full-precision eval-mode forward of the PyTorch module."""
    def layer(h, w, b, bn):
        g, be, m, v = bn
        h = h @ w + b
        h = (h - m) / jnp.sqrt(v + EPS) * g + be
        return jnp.maximum(h, 0.0)      # Dropout = identity in eval mode
    return layer(layer(x, w1, b1, bn1), w2, b2, bn2)


def reference_like_kernel(x, w1f, b1f, w2f, b2f):
    """Pure-JAX mirror of the kernel arithmetic (bf16 operands, f32 accumulate)."""
    h = jnp.dot(x.astype(w1f.dtype), w1f, preferred_element_type=jnp.float32)
    h = jnp.maximum(h + b1f, 0.0)
    h2 = jnp.dot(h.astype(w2f.dtype), w2f, preferred_element_type=jnp.float32)
    h2 = jnp.maximum(h2 + b2f, 0.0)
    return h2[:, :D2]


if __name__ == "__main__":
    B = 16
    x = jax.random.normal(jax.random.PRNGKey(0), (B, LATENT), jnp.float32)
    raw = make_params()
    w1f, b1f, w2f, b2f = fold_and_pad_params(*raw)

    out = vae_decoder(x, w1f, b1f, w2f, b2f)
    out = jax.block_until_ready(out)
    assert out.shape == (B, D2)

    # Tight check vs. a pure-JAX mirror of the kernel arithmetic.
    ref_k = reference_like_kernel(x, w1f, b1f, w2f, b2f)
    assert jnp.allclose(out, ref_k, atol=1e-3, rtol=1e-3)

    # Looser sanity check vs. the full-precision eval-mode forward
    # (bf16 matmul operands introduce ~1e-3 absolute error at these scales).
    ref = reference_f32(x, *raw)
    assert jnp.allclose(out, ref, atol=5e-2, rtol=5e-2)

    print("KERNEL_OK")
</pallas_src>

<mosaic_0001>
module attributes {stable_mosaic.version = 11 : i64} {
  func.func @vae_decoder_kernel(%arg0: i32, %arg1: memref<8x10xbf16, #tpu.memory_space<vmem>>, %arg2: memref<10x64xbf16, #tpu.memory_space<vmem>>, %arg3: memref<1x64xf32, #tpu.memory_space<vmem>>, %arg4: memref<64x128xbf16, #tpu.memory_space<vmem>>, %arg5: memref<1x128xf32, #tpu.memory_space<vmem>>, %arg6: memref<8x128xf32, #tpu.memory_space<vmem>>) attributes {dimension_semantics = [#tpu.dimension_semantics<parallel>], iteration_bounds = array<i64: 2>, scalar_prefetch = 0 : i64, scratch_operands = 0 : i64, tpu.core_type = #tpu.core_type<tc>, window_params = [{transform_indices = @transform_0, window_bounds = array<i64: 8, 10>}, {pipeline_mode = #tpu.pipeline_mode<synchronous>, transform_indices = @transform_1, window_bounds = array<i64: 10, 64>}, {pipeline_mode = #tpu.pipeline_mode<synchronous>, transform_indices = @transform_2, window_bounds = array<i64: 1, 64>}, {pipeline_mode = #tpu.pipeline_mode<synchronous>, transform_indices = @transform_3, window_bounds = array<i64: 64, 128>}, {pipeline_mode = #tpu.pipeline_mode<synchronous>, transform_indices = @transform_4, window_bounds = array<i64: 1, 128>}, {transform_indices = @transform_5, window_bounds = array<i64: 8, 128>}]} {
    %c0 = arith.constant 0 : index
    %c0_0 = arith.constant 0 : index
    %0 = vector.load %arg1[%c0, %c0_0] : memref<8x10xbf16, #tpu.memory_space<vmem>>, vector<8x10xbf16>
    %c0_1 = arith.constant 0 : index
    %c0_2 = arith.constant 0 : index
    %1 = vector.load %arg2[%c0_1, %c0_2] : memref<10x64xbf16, #tpu.memory_space<vmem>>, vector<10x64xbf16>
    %cst = arith.constant dense<0.000000e+00> : vector<8x64xf32>
    %2 = tpu.matmul %0, %1, %cst {dimension_numbers = #tpu.dot_dimension_numbers<[1], [0], [0], [1], [0, 0, 1, 1], [], []>} : vector<8x10xbf16>, vector<10x64xbf16>, vector<8x64xf32> -> vector<8x64xf32>
    %c0_3 = arith.constant 0 : index
    %c0_4 = arith.constant 0 : index
    %3 = vector.load %arg3[%c0_3, %c0_4] : memref<1x64xf32, #tpu.memory_space<vmem>>, vector<1x64xf32>
    %4 = vector.broadcast %3 : vector<1x64xf32> to vector<8x64xf32>
    %5 = arith.addf %2, %4 : vector<8x64xf32>
    %cst_5 = arith.constant 0.000000e+00 : f32
    %6 = vector.broadcast %cst_5 : f32 to vector<8x64xf32>
    %7 = arith.maximumf %5, %6 : vector<8x64xf32>
    %8 = arith.truncf %7 : vector<8x64xf32> to vector<8x64xbf16>
    %c0_6 = arith.constant 0 : index
    %c0_7 = arith.constant 0 : index
    %9 = vector.load %arg4[%c0_6, %c0_7] : memref<64x128xbf16, #tpu.memory_space<vmem>>, vector<64x128xbf16>
    %cst_8 = arith.constant dense<0.000000e+00> : vector<8x128xf32>
    %10 = tpu.matmul %8, %9, %cst_8 {dimension_numbers = #tpu.dot_dimension_numbers<[1], [0], [0], [1], [0, 0, 1, 1], [], []>} : vector<8x64xbf16>, vector<64x128xbf16>, vector<8x128xf32> -> vector<8x128xf32>
    %c0_9 = arith.constant 0 : index
    %c0_10 = arith.constant 0 : index
    %11 = vector.load %arg5[%c0_9, %c0_10] : memref<1x128xf32, #tpu.memory_space<vmem>>, vector<1x128xf32>
    %12 = vector.broadcast %11 : vector<1x128xf32> to vector<8x128xf32>
    %13 = arith.addf %10, %12 : vector<8x128xf32>
    %cst_11 = arith.constant 0.000000e+00 : f32
    %14 = vector.broadcast %cst_11 : f32 to vector<8x128xf32>
    %15 = arith.maximumf %13, %14 : vector<8x128xf32>
    %c0_12 = arith.constant 0 : index
    %c0_13 = arith.constant 0 : index
    %16 = vector.load %arg6[%c0_12, %c0_13] : memref<8x128xf32, #tpu.memory_space<vmem>>, vector<8x128xf32>
    tpu.vector_store %arg6[%c0_12, %c0_13], %15 {strides = array<i32>} : memref<8x128xf32, #tpu.memory_space<vmem>>, vector<8x128xf32>,
    return
  }
  func.func @transform_0(%arg0: i32) -> (i32, i32) {
    %c0_i32 = arith.constant 0 : i32
    %c0_i32_0 = arith.constant 0 : i32
    return %arg0, %c0_i32 : i32, i32
  }
  func.func @transform_1(%arg0: i32) -> (i32, i32) {
    %c0_i32 = arith.constant 0 : i32
    %c0_i32_0 = arith.constant 0 : i32
    %c0_i32_1 = arith.constant 0 : i32
    return %c0_i32, %c0_i32_0 : i32, i32
  }
  func.func @transform_2(%arg0: i32) -> (i32, i32) {
    %c0_i32 = arith.constant 0 : i32
    %c0_i32_0 = arith.constant 0 : i32
    %c0_i32_1 = arith.constant 0 : i32
    return %c0_i32, %c0_i32_0 : i32, i32
  }
  func.func @transform_3(%arg0: i32) -> (i32, i32) {
    %c0_i32 = arith.constant 0 : i32
    %c0_i32_0 = arith.constant 0 : i32
    %c0_i32_1 = arith.constant 0 : i32
    return %c0_i32, %c0_i32_0 : i32, i32
  }
  func.func @transform_4(%arg0: i32) -> (i32, i32) {
    %c0_i32 = arith.constant 0 : i32
    %c0_i32_0 = arith.constant 0 : i32
    %c0_i32_1 = arith.constant 0 : i32
    return %c0_i32, %c0_i32_0 : i32, i32
  }
  func.func @transform_5(%arg0: i32) -> (i32, i32) {
    %c0_i32 = arith.constant 0 : i32
    %c0_i32_0 = arith.constant 0 : i32
    return %arg0, %c0_i32 : i32, i32
  }
}

</mosaic_0001>

<bundles_post_ra>
// kernel: tpu_custom_call.1
= control target key start
LH: loop header
LB: loop body
LE: loop exit
PB: predicated region body
PF: predicated region fallthrough
CT: control target
= control target key end

     0   :  { %10 = vsyncpa [#allocation3], 0  ;;  %s933_s0 = inlined_call_operand.hbm [shape: bf16[16,10], index: 0, kind: input, shape index: {}]   ;;  %s934_s1 = inlined_call_operand.hbm [shape: bf16[10,64], index: 1, kind: input, shape index: {}]   ;;  %s935_s2 = inlined_call_operand.vmem [shape: f32[1,64], index: 2, kind: input, shape index: {}]   ;;  %s936_s3 = inlined_call_operand.hbm [shape: bf16[64,128], index: 3, kind: input, shape index: {}]   ;;  %s937_s4 = inlined_call_operand.vmem [shape: f32[1,128], index: 4, kind: input, shape index: {}]   ;;  %s938_s5 = inlined_call_operand.hbm [shape: f32[16,128], index: 5, kind: output, shape index: {}]  }
   0x1   :  { %12 = vsyncpa [#allocation3 + $0x1], 0 }
   0x2   :  { %13 = vsyncpa [#allocation6], 0 }
   0x3   :  { %14 = vsyncpa [#allocation4], 0 }
   0x4   :  { %16 = vsyncpa [#allocation4 + $0x1], 0  ;;  %s781_s18 = smov 0   ;;  %s783_s19 = smov 0  }
   0x5   :  { %s785_s20 = smov 0   ;;  %s787_s21 = smov 0  }
   0x6 LB: > { %s174_s24 = sshll.u32 %s934_s1, 4  ;;  %s805_s25 = sadd.s32 4294967295, %s745_s21   ;;  %s745_s21 = sphi %s787_s21, %s949_s21   ;;  %s741_s20 = sphi %s785_s20, %s948_s20   ;;  %s737_s19 = sphi %s783_s19, %s947_s19   ;;  %s733_s18 = sphi %s781_s18, %s946_s18   ;;  %s175_s24 = int_to_ptr.hbm [resolvable:$true] %s174_s24 }
   0x7   : > { %p472_p0 = scmp.ge.s32.totalorder %s745_s21, 1  ;;  %p43_p1 = scmp.eq.s32.totalorder %s805_s25, 0 }
   0x8   : > { %p163_p2 = scmp.lt.s32.totalorder %s745_s21, 3  ;;  %s747_s27 = smov [#allocation5]  }
   0x9   : > { %s176_s28 = sshll.u32 %s747_s27, 4  ;;  %s191_s6 = sshll.u32 %s936_s3, 4  ;;  %s177_s28 = int_to_ptr.vmem [resolvable:$true] %s176_s28  ;;  %s192_s6 = int_to_ptr.hbm [resolvable:$true] %s191_s6 }
   0xa   : > { %p810_p3 = pnand %p472_p0, %p163_p2  ;;  %s748_s7 = smov [#allocation7]  }
   0xb   : > { %s193_s8 = sshll.u32 %s748_s7, 4  ;;  %s749_s9 = smov 64   ;;  %s194_s8 = int_to_ptr.vmem [resolvable:$true] %s193_s8 }
   0xc   : > { %p526_p4 = pneg %p810_p3  ;;  %s750_s10 = smov 4  }
   0xd   : > { %s471_s11 = sadd.s32 4294967294, %s745_s21   ;;  %s824_s12 = sadd.s32 1, %s745_s21  }
   0xe   : > { %p527_p6 = pnand %p526_p4, %p43_p1  ;;  %s26_s13 = ssub.s32 %s745_s21, %s824_s12 }
   0xf   : > { %s29_s14 = sadd.s32 1, %s741_s20  ;;  %p27_p7 = scmp.eq.s32.totalorder %s26_s13, 0 }
  0x10   : > { %529 = dma.hbm_to_vmem [thread:$0]  (!%p527_p6), %s175_s24, 128, %s177_s28, [#allocation6], %s749_s9, %s749_s9, %s750_s10  }
  0x11   : > { %532 = dma.hbm_to_vmem [thread:$0]  (!%p527_p6), %s192_s6, 512, %s194_s8, [#allocation6], %s749_s9, %s749_s9, %s750_s10  }
  0x12   : > { %p36_p8 = scmp.ne.s32.totalorder %s741_s20, %s737_s19  ;;  %p37_p9 = scmp.eq.s32.totalorder %s745_s21, 0 }
  0x13   : > { %p42_p10 = scmp.ne.s32.totalorder %s737_s19, %s733_s18  ;;  %p150_p13 = scmp.eq.s32.totalorder %s805_s25, 1 }
  0x14   : > { %s835_s15 = scalar_select %p27_p7, %s741_s20, %s29_s14  }
  0x15   : > { %p837_p11 = por %p37_p9, %p36_p8  ;;  %p843_p12 = por %p43_p1, %p42_p10 }
  0x16   : > { %p156_p0 = scmp.eq.s32.totalorder %s471_s11, 1  ;;  %p543_p2 = scmp.lt.s32.totalorder %s745_s21, 2 }
  0x17   : > { %s210_s22 = sand.u32 1, %s741_s20   ;;  %p850_p4 = por %p150_p13, %p36_p8 }
  0x18   : > { %p854_p6 = por %p156_p0, %p42_p10  ;;  %s476_s27 = sshll.u32 %s210_s22, 2 }
  0x19   : > { %s477_s28 = sshll.u32 %s745_s21, 2  ;;  %s214_s7 = scalar_lea.vmem [#allocation2], %s476_s27 }
  0x1a   : > { %s218_s6 = scalar_lea.hbm %s933_s0, %s477_s28  ;;  %s222_s8 = sshll.u32 %s214_s7, 4  ;;  %s223_s8 = int_to_ptr.vmem [resolvable:$true] %s222_s8 }
  0x1b   : > { %s220_s9 = sshll.u32 %s218_s6, 4  ;;  %p864_p7 = pnand %p543_p2, %p837_p11  ;;  %s221_s9 = int_to_ptr.hbm [resolvable:$true] %s220_s9 }
  0x1c   : > { %s211_s11 = scalar_lea.sflag [#allocation3], %s210_s22  ;;  %s645_s13 = sshra.s32 %s221_s9, 4  ;;  %s646_s13 = int_to_ptr.hbm [resolvable:$true] %s645_s13 }
  0x1d   : > { %s647_s14 = scalar_lea.hbm %s646_s13, 4  ;;  %p649_p9 = pneg %p864_p7 }
  0x1e   : > { %p648_p8 = scmp.ne.s32.totalorder %s646_s13, %s647_s14  ;;  %s652_s29 = scalar_lea.hbm %s933_s0, 8 }
  0x1f   : > { %p653_p11 = scmp.lt.s32.totalorder %s646_s13, %s933_s0  ;;  %p654_p0 = scmp.lt.s32.totalorder %s652_s29, %s647_s14 }
  0x20   : > { %p650_p10 = pnand %p649_p9, %p648_p8 }
  0x21   : > { %p655_p2 = por %p654_p0, %p653_p11 }
  0x22   : > { %p651_p13 = pneg %p650_p10 }
  0x24   : > { %p656_p5 = pnand %p655_p2, %p651_p13 }
  0x26   : > { %659 = shalt.err (!%p656_p5)
}
  0x27   : > { %536 = dma.hbm_to_vmem [thread:$0]  (!%p864_p7), %s221_s9, 64, %s223_s8, %s211_s11  }
  0x28   : > { %231 = sbr.rel (%p810_p3) target bundleno = 321 (0x141), region = 40  ;;  %s881_s22 = sand.u32 (!%p810_p3), 1, %s737_s19  }
  0x29   : > { %s479_s6 = sshll.u32 (!%p810_p3), %s881_s22, 2  ;;  %s234_s7 = scalar_lea.sflag (!%p810_p3), [#allocation3], %s881_s22 }
  0x2a   : > { %s237_s27 = scalar_lea.vmem (!%p810_p3), [#allocation2], %s479_s6 }
  0x2d   : > { %720 = dma.done.wait (%p843_p12), %s234_s7, 64  }
  0x2e   : > { %722 = vsyncadd (%p843_p12), %s234_s7, 4294967232 }
  0x2f   : > { %724 = dma.done.wait (%p43_p1), [#allocation6], 640  }
  0x30   : > { %726 = vsyncadd (%p43_p1), [#allocation6], 4294966656  ;;  %v485_v0 = vld [vmem:[#allocation5] sm:$0xf]  ;;  %v509_v1 = vld [vmem:[#allocation5] sm:$0x10] }
  0x31   : > { %vm292_vm0 = vcmask 1044480   ;;  %v486_v2 = vor.u32 %v509_v1, %v485_v0  ;;  %v513_v3 = vld [vmem:[#allocation7 + $0x18] sm:$0xff]  ;;  %v512_v5 = vld [vmem:[#allocation7 + $0x10] sm:$0xff]  ;;  %vm288_vm1 = vcmask 80896   ;;  %v511_v7 = vld [vmem:[#allocation7 + $0x8] sm:$0xff]  ;;  %vm347_vm2 = vcmask 523264  }
  0x32   : > { %355 = vmatpush.bf16.msra.mxu1 %v513_v3  ;;  %v276_v6 = vld [vmem:[%s237_s27] sm:$0xf]  ;;  %v510_v8 = vld [vmem:[#allocation7] sm:$0xff]  ;;  %s482_s8 = sshll.u32 %s881_s22, 3  ;;  %s506_s9 = sshll.u32 %s805_s25, 3 }
  0x33   : > { %v294_v4 = vsel %vm292_vm0, %v486_v2, 0  ;;  %v583_v9 = vld [vmem:[%s935_s2] ss:$0 sm:$0xff]  ;;  %s377_s28 = scalar_lea.hbm %s938_s5, %s506_s9  ;;  %s274_s29 = scalar_lea.vmem [#allocation8], %s482_s8 }
  0x34   : > { %303 = vmatpush.bf16.msra.mxu0 %v294_v4  ;;  %v584_v15 = vld [vmem:[%s937_s4] ss:$0 sm:$0xff]  ;;  %s379_s30 = sshll.u32 %s274_s29, 4  ;;  %s381_s16 = sshll.u32 %s377_s28, 4  ;;  %s380_s30 = int_to_ptr.vmem [resolvable:$true] %s379_s30  ;;  %s382_s16 = int_to_ptr.hbm [resolvable:$true] %s381_s16 }
  0x35   : > { %s367_s6 = scalar_lea.sflag [#allocation4], %s881_s22  ;;  %s689_s25 = sshra.s32 %s382_s16, 4  ;;  %s690_s25 = int_to_ptr.hbm [resolvable:$true] %s689_s25 }
  0x36   : > { %356 = vmatpush.bf16.msra.mxu1 %v512_v5  ;;  %s691_s7 = scalar_lea.hbm %s690_s25, 8  ;;  %s695_s17 = scalar_lea.hbm %s938_s5, 16 }
  0x37   : > { %487 = vmatmul.msk.bf16.vlgmr.msra.gmra.mxu0 %vm288_vm1, %v276_v6  ;;  %p692_p1 = scmp.ne.s32.totalorder %s690_s25, %s691_s7  ;;  %p696_p12 = scmp.lt.s32.totalorder %s690_s25, %s938_s5 }
  0x38   : > { %p697_p7 = scmp.lt.s32.totalorder %s695_s17, %s691_s7 }
  0x39   : > { %p693_p3 = pnand %p692_p1, %p850_p4 }
  0x3a   : > { %357 = vmatpush.bf16.msra.mxu1 %v511_v7  ;;  %p698_p8 = por %p697_p7, %p696_p12 }
  0x3b   : > { %p694_p5 = pneg %p693_p3 }
  0x3d   : > { %p699_p9 = pnand %p698_p8, %p694_p5 }
  0x3e   : > { %358 = vmatpush.bf16.msra.mxu1 %v510_v8 }
  0xb4   : > { %v305_v10 = vpop.f32.mrf.mxu0 }
  0xb5   : > { %v306_v11 = vadd.f32 %v583_v9, %v305_v10 }
  0xb7   : > { %v309_v12 = vmax.f32 %v306_v11, 0.0 }
  0xb9   : > { %v310_v13 = vpack.c.bf16 %v309_v12, %v309_v12 }
  0xbb   : > { %504 = vmatmul.msk.bf16.vlgmr.msra.gmra.mxu1 %vm347_vm2, %v310_v13 }
  0xbc   : > { %v307_v14 = vpop.f32.mrf.mxu0 }
 0x138   : > { %v360_v16 = vpop.f32.mrf.mxu1 }
 0x139   : > { %v361_v17 = vadd.f32 %v584_v15, %v360_v16 }
 0x13b   : > { %v364_v18 = vmax.f32 %v361_v17, 0.0 }
 0x13d   : > { %365 = vst [vmem:[%s274_s29] sm:$0xff] %v364_v18 }
 0x13e   : > { %702 = shalt.err (!%p699_p9)
}
 0x13f   : > { %524 = dma.vmem_to_hbm [thread:$0]  (%p850_p4), %s380_s30, 128, %s382_s16, %s367_s6  }
 0x140   : > { %v362_v19 = vpop.f32.mrf.mxu1 }
 0x141 PF: > { %s393_s22 = sand.u32 1, %s733_s18   ;;  %p945_p10 = scmp.ge.s32.totalorder %s745_s21, 2 }
 0x142   : > { %s394_s10 = scalar_lea.sflag [#allocation4], %s393_s22 }
 0x143   : > { %p538_p13 = pnand %p945_p10, %p854_p6 }
 0x145   : > { %p539_p11 = pneg %p538_p13 }
 0x147   : > { %728 = dma.done.wait (%p539_p11), %s394_s10, 128  }
 0x148   : > { %730 = vsyncadd (%p539_p11), %s394_s10, 4294967168  ;;  %p19_p0 = scmp.ge.s32.totalorder %s824_s12, 4   ;;  %s946_s18 = smov %s737_s19 }
 0x149   : > { %s947_s19 = smov %s741_s20  ;;  %s948_s20 = smov %s835_s15 }
 0x14a   : > { %s949_s21 = smov %s824_s12  ;;  %21 = sbr.rel (!%p19_p0) target bundleno = 6 (0x6), region = 93 }
 0x14f   :  { %400 = vsyncpa [#allocation3], 1 }
 0x150   :  { %402 = vsyncpa [#allocation3 + $0x1], 1 }
 0x151   :  { %403 = vsyncpa [#allocation6], 1 }
 0x152   :  { %404 = vsyncpa [#allocation4], 1 }
 0x153   :  { %406 = vsyncpa [#allocation4 + $0x1], 1 }

</bundles_post_ra>
